<compile_context>
chip_gen: v7x
topology: tpu7x:2x2x1
jax: 0.10.0
libtpu: 0.0.40
codegen_flags: <defaults>
</compile_context>

<pallas_src>
import functools

import jax
import jax.numpy as jnp
from jax.experimental import pallas as pl
from jax.experimental.pallas import tpu as pltpu

_LANE = 128


def mlp_kernel(params_ref, x_ref, o_ref):
    # params_ref : SMEM f32[21]
    #   [0:6]   w1  (in=2, out=3), row-major  (transposed vs. PyTorch)
    #   [6:9]   b1  (3,)
    #   [9:21]  w2  (in=3, out=4), row-major  (transposed vs. PyTorch)
    # x_ref : VMEM (2, TILE_B)     o_ref : VMEM (4, TILE_B)
    x = x_ref[...]                       # (2, TILE_B) single lane-dense load
    x0 = x[0:1, :]                       # (1, TILE_B)
    x1 = x[1:2, :]

    def w1_(k, c):
        return params_ref[k * 3 + c]

    def b1_(c):
        return params_ref[6 + c]

    def w2_(k, c):
        return params_ref[9 + k * 4 + c]

    # Layer 1 + ReLU: h_c = relu(w1[0,c]*x0 + w1[1,c]*x1 + b1[c]),  c = 0..2
    # Bias folded straight into the accumulator (one VALU add per channel).
    h = []
    for c in range(3):
        acc = x0 * w1_(0, c) + x1 * w1_(1, c) + b1_(c)
        h.append(jnp.maximum(acc, 0.0))

    # Layer 2 (no bias): out_c = sum_k w2[k,c] * h_k,  c = 0..3
    rows = []
    for c in range(4):
        rows.append(h[0] * w2_(0, c) + h[1] * w2_(1, c) + h[2] * w2_(2, c))

    # One full-tile store (lane axis is a multiple of 128 -> unmasked vst).
    o_ref[...] = jnp.concatenate(rows, axis=0).astype(o_ref.dtype)


@functools.partial(jax.jit, static_argnames=("tile_b",))
def mlp_forward(x, fc1_w, fc1_b, fc2_w, *, tile_b=4096):
    """x: (B, 2) f32.  Weights in PyTorch layout:
       fc1_w: (3, 2), fc1_b: (3,), fc2_w: (4, 3).  Returns (B, 4) f32."""
    B = x.shape[0]

    # Transposed (in, out) convention for the kernel's unrolled FMAs.
    w1 = fc1_w.T.astype(jnp.float32)             # (2, 3)
    b1 = fc1_b.astype(jnp.float32)               # (3,)
    w2 = fc2_w.T.astype(jnp.float32)             # (3, 4)

    # One packed parameter array -> one tiny SMEM transfer instead of three.
    params = jnp.concatenate(
        [w1.reshape(-1), b1.reshape(-1), w2.reshape(-1)])   # (21,) f32

    # Batch on the lane axis.
    x_t = x.astype(jnp.float32).T                # (2, B)

    # Lane-aligned batch tile (multiple of 128); clamp for small B.
    tile_b = max(_LANE, min(tile_b, pl.cdiv(B, _LANE) * _LANE))
    b_pad = pl.cdiv(B, tile_b) * tile_b
    if b_pad != B:
        x_t = jnp.pad(x_t, ((0, 0), (0, b_pad - B)))

    out_t = pl.pallas_call(
        mlp_kernel,
        out_shape=jax.ShapeDtypeStruct((4, b_pad), jnp.float32),
        grid=(b_pad // tile_b,),
        in_specs=[
            pl.BlockSpec(memory_space=pltpu.MemorySpace.SMEM),   # packed params
            pl.BlockSpec((2, tile_b), lambda i: (0, i)),         # x tile
        ],
        out_specs=pl.BlockSpec((4, tile_b), lambda i: (0, i)),
        compiler_params=pltpu.CompilerParams(
            dimension_semantics=("parallel",)),
    )(params, x_t)

    return out_t[:, :B].T                        # (B, 4)


def init_params(key):
    """PyTorch-layout params: fc1.weight (3,2), fc1.bias (3,), fc2.weight (4,3)."""
    k1, k2, k3 = jax.random.split(key, 3)
    bound1 = 1.0 / jnp.sqrt(2.0)   # fan_in = 2
    bound2 = 1.0 / jnp.sqrt(3.0)   # fan_in = 3
    fc1_w = jax.random.uniform(k1, (3, 2), jnp.float32, -bound1, bound1)
    fc1_b = jax.random.uniform(k2, (3,), jnp.float32, -bound1, bound1)
    fc2_w = jax.random.uniform(k3, (4, 3), jnp.float32, -bound2, bound2)
    return fc1_w, fc1_b, fc2_w


def _reference(x, fc1_w, fc1_b, fc2_w):
    h = jnp.maximum(x @ fc1_w.T + fc1_b, 0.0)
    return h @ fc2_w.T


if __name__ == "__main__":
    key = jax.random.PRNGKey(0)
    kx, kx2, kp = jax.random.split(key, 3)
    fc1_w, fc1_b, fc2_w = init_params(kp)

    # Small-batch case (matches the module's typical use).
    batch = 2
    x = jax.random.normal(kx, (batch, 2), jnp.float32)
    out = jax.block_until_ready(mlp_forward(x, fc1_w, fc1_b, fc2_w))
    ref = _reference(x, fc1_w, fc1_b, fc2_w)
    assert out.shape == (batch, 4)
    assert jnp.allclose(out, ref, atol=1e-5), "mismatch vs reference (batch=2)"

    # Non-multiple-of-128 batch exercises the lane padding + multi-tile grid.
    batch2 = 200
    x2 = jax.random.normal(kx2, (batch2, 2), jnp.float32)
    out2 = jax.block_until_ready(mlp_forward(x2, fc1_w, fc1_b, fc2_w))
    ref2 = _reference(x2, fc1_w, fc1_b, fc2_w)
    assert out2.shape == (batch2, 4)
    assert jnp.allclose(out2, ref2, atol=1e-5), "mismatch vs reference (batch=200)"

    print("KERNEL_OK")
</pallas_src>

<mosaic_0001>
module attributes {stable_mosaic.version = 11 : i64} {
  func.func @mlp_kernel(%arg0: i32, %arg1: memref<21xf32, #tpu.memory_space<smem>>, %arg2: memref<2x128xf32, #tpu.memory_space<vmem>>, %arg3: memref<4x128xf32, #tpu.memory_space<vmem>>) attributes {dimension_semantics = [#tpu.dimension_semantics<parallel>], iteration_bounds = array<i64: 1>, scalar_prefetch = 0 : i64, scratch_operands = 0 : i64, tpu.core_type = #tpu.core_type<tc>, window_params = [{transform_indices = @transform_0, window_bounds = array<i64: 21>}, {transform_indices = @transform_1, window_bounds = array<i64: 2, 128>}, {transform_indices = @transform_2, window_bounds = array<i64: 4, 128>}]} {
    %c0 = arith.constant 0 : index
    %c0_0 = arith.constant 0 : index
    %0 = vector.load %arg2[%c0, %c0_0] : memref<2x128xf32, #tpu.memory_space<vmem>>, vector<2x128xf32>
    %1 = vector.extract_strided_slice %0 {offsets = [0, 0], sizes = [1, 128], strides = [1, 1]} : vector<2x128xf32> to vector<1x128xf32>
    %2 = vector.extract_strided_slice %0 {offsets = [1, 0], sizes = [1, 128], strides = [1, 1]} : vector<2x128xf32> to vector<1x128xf32>
    %c0_1 = arith.constant 0 : index
    %3 = memref.load %arg1[%c0_1] : memref<21xf32, #tpu.memory_space<smem>>
    %4 = vector.broadcast %3 : f32 to vector<1x128xf32>
    %5 = arith.mulf %1, %4 : vector<1x128xf32>
    %c3 = arith.constant 3 : index
    %6 = memref.load %arg1[%c3] : memref<21xf32, #tpu.memory_space<smem>>
    %7 = vector.broadcast %6 : f32 to vector<1x128xf32>
    %8 = arith.mulf %2, %7 : vector<1x128xf32>
    %9 = arith.addf %5, %8 : vector<1x128xf32>
    %c6 = arith.constant 6 : index
    %10 = memref.load %arg1[%c6] : memref<21xf32, #tpu.memory_space<smem>>
    %11 = vector.broadcast %10 : f32 to vector<1x128xf32>
    %12 = arith.addf %9, %11 : vector<1x128xf32>
    %cst = arith.constant 0.000000e+00 : f32
    %13 = vector.broadcast %cst : f32 to vector<1x128xf32>
    %14 = arith.maximumf %12, %13 : vector<1x128xf32>
    %c1 = arith.constant 1 : index
    %15 = memref.load %arg1[%c1] : memref<21xf32, #tpu.memory_space<smem>>
    %16 = vector.broadcast %15 : f32 to vector<1x128xf32>
    %17 = arith.mulf %1, %16 : vector<1x128xf32>
    %c4 = arith.constant 4 : index
    %18 = memref.load %arg1[%c4] : memref<21xf32, #tpu.memory_space<smem>>
    %19 = vector.broadcast %18 : f32 to vector<1x128xf32>
    %20 = arith.mulf %2, %19 : vector<1x128xf32>
    %21 = arith.addf %17, %20 : vector<1x128xf32>
    %c7 = arith.constant 7 : index
    %22 = memref.load %arg1[%c7] : memref<21xf32, #tpu.memory_space<smem>>
    %23 = vector.broadcast %22 : f32 to vector<1x128xf32>
    %24 = arith.addf %21, %23 : vector<1x128xf32>
    %cst_2 = arith.constant 0.000000e+00 : f32
    %25 = vector.broadcast %cst_2 : f32 to vector<1x128xf32>
    %26 = arith.maximumf %24, %25 : vector<1x128xf32>
    %c2 = arith.constant 2 : index
    %27 = memref.load %arg1[%c2] : memref<21xf32, #tpu.memory_space<smem>>
    %28 = vector.broadcast %27 : f32 to vector<1x128xf32>
    %29 = arith.mulf %1, %28 : vector<1x128xf32>
    %c5 = arith.constant 5 : index
    %30 = memref.load %arg1[%c5] : memref<21xf32, #tpu.memory_space<smem>>
    %31 = vector.broadcast %30 : f32 to vector<1x128xf32>
    %32 = arith.mulf %2, %31 : vector<1x128xf32>
    %33 = arith.addf %29, %32 : vector<1x128xf32>
    %c8 = arith.constant 8 : index
    %34 = memref.load %arg1[%c8] : memref<21xf32, #tpu.memory_space<smem>>
    %35 = vector.broadcast %34 : f32 to vector<1x128xf32>
    %36 = arith.addf %33, %35 : vector<1x128xf32>
    %cst_3 = arith.constant 0.000000e+00 : f32
    %37 = vector.broadcast %cst_3 : f32 to vector<1x128xf32>
    %38 = arith.maximumf %36, %37 : vector<1x128xf32>
    %c9 = arith.constant 9 : index
    %39 = memref.load %arg1[%c9] : memref<21xf32, #tpu.memory_space<smem>>
    %40 = vector.broadcast %39 : f32 to vector<1x128xf32>
    %41 = arith.mulf %14, %40 : vector<1x128xf32>
    %c13 = arith.constant 13 : index
    %42 = memref.load %arg1[%c13] : memref<21xf32, #tpu.memory_space<smem>>
    %43 = vector.broadcast %42 : f32 to vector<1x128xf32>
    %44 = arith.mulf %26, %43 : vector<1x128xf32>
    %45 = arith.addf %41, %44 : vector<1x128xf32>
    %c17 = arith.constant 17 : index
    %46 = memref.load %arg1[%c17] : memref<21xf32, #tpu.memory_space<smem>>
    %47 = vector.broadcast %46 : f32 to vector<1x128xf32>
    %48 = arith.mulf %38, %47 : vector<1x128xf32>
    %49 = arith.addf %45, %48 : vector<1x128xf32>
    %c10 = arith.constant 10 : index
    %50 = memref.load %arg1[%c10] : memref<21xf32, #tpu.memory_space<smem>>
    %51 = vector.broadcast %50 : f32 to vector<1x128xf32>
    %52 = arith.mulf %14, %51 : vector<1x128xf32>
    %c14 = arith.constant 14 : index
    %53 = memref.load %arg1[%c14] : memref<21xf32, #tpu.memory_space<smem>>
    %54 = vector.broadcast %53 : f32 to vector<1x128xf32>
    %55 = arith.mulf %26, %54 : vector<1x128xf32>
    %56 = arith.addf %52, %55 : vector<1x128xf32>
    %c18 = arith.constant 18 : index
    %57 = memref.load %arg1[%c18] : memref<21xf32, #tpu.memory_space<smem>>
    %58 = vector.broadcast %57 : f32 to vector<1x128xf32>
    %59 = arith.mulf %38, %58 : vector<1x128xf32>
    %60 = arith.addf %56, %59 : vector<1x128xf32>
    %c11 = arith.constant 11 : index
    %61 = memref.load %arg1[%c11] : memref<21xf32, #tpu.memory_space<smem>>
    %62 = vector.broadcast %61 : f32 to vector<1x128xf32>
    %63 = arith.mulf %14, %62 : vector<1x128xf32>
    %c15 = arith.constant 15 : index
    %64 = memref.load %arg1[%c15] : memref<21xf32, #tpu.memory_space<smem>>
    %65 = vector.broadcast %64 : f32 to vector<1x128xf32>
    %66 = arith.mulf %26, %65 : vector<1x128xf32>
    %67 = arith.addf %63, %66 : vector<1x128xf32>
    %c19 = arith.constant 19 : index
    %68 = memref.load %arg1[%c19] : memref<21xf32, #tpu.memory_space<smem>>
    %69 = vector.broadcast %68 : f32 to vector<1x128xf32>
    %70 = arith.mulf %38, %69 : vector<1x128xf32>
    %71 = arith.addf %67, %70 : vector<1x128xf32>
    %c12 = arith.constant 12 : index
    %72 = memref.load %arg1[%c12] : memref<21xf32, #tpu.memory_space<smem>>
    %73 = vector.broadcast %72 : f32 to vector<1x128xf32>
    %74 = arith.mulf %14, %73 : vector<1x128xf32>
    %c16 = arith.constant 16 : index
    %75 = memref.load %arg1[%c16] : memref<21xf32, #tpu.memory_space<smem>>
    %76 = vector.broadcast %75 : f32 to vector<1x128xf32>
    %77 = arith.mulf %26, %76 : vector<1x128xf32>
    %78 = arith.addf %74, %77 : vector<1x128xf32>
    %c20 = arith.constant 20 : index
    %79 = memref.load %arg1[%c20] : memref<21xf32, #tpu.memory_space<smem>>
    %80 = vector.broadcast %79 : f32 to vector<1x128xf32>
    %81 = arith.mulf %38, %80 : vector<1x128xf32>
    %82 = arith.addf %78, %81 : vector<1x128xf32>
    %83 = tpu.concatenate %49, %60, %71, %82 in 0 : vector<1x128xf32>, vector<1x128xf32>, vector<1x128xf32>, vector<1x128xf32> -> vector<4x128xf32>
    %c0_4 = arith.constant 0 : index
    %c0_5 = arith.constant 0 : index
    %84 = vector.load %arg3[%c0_4, %c0_5] : memref<4x128xf32, #tpu.memory_space<vmem>>, vector<4x128xf32>
    tpu.vector_store %arg3[%c0_4, %c0_5], %83 {strides = array<i32>} : memref<4x128xf32, #tpu.memory_space<vmem>>, vector<4x128xf32>,
    return
  }
  func.func @transform_0(%arg0: i32) -> i32 {
    %c0_i32 = arith.constant 0 : i32
    %c0_i32_0 = arith.constant 0 : i32
    return %c0_i32 : i32
  }
  func.func @transform_1(%arg0: i32) -> (i32, i32) {
    %c0_i32 = arith.constant 0 : i32
    %c0_i32_0 = arith.constant 0 : i32
    return %c0_i32, %arg0 : i32, i32
  }
  func.func @transform_2(%arg0: i32) -> (i32, i32) {
    %c0_i32 = arith.constant 0 : i32
    %c0_i32_0 = arith.constant 0 : i32
    return %c0_i32, %arg0 : i32, i32
  }
}

</mosaic_0001>

<bundles_post_ra>
// kernel: mlp_forward.1
= control target key start
LH: loop header
LB: loop body
LE: loop exit
PB: predicated region body
PF: predicated region fallthrough
CT: control target
= control target key end

     0   :  { %7 = vsyncpa [#allocation3], 0  ;;  %s237_s0 = inlined_call_operand.vmem [shape: f32[21], index: 0, kind: input, shape index: {}]   ;;  %s238_s1 = inlined_call_operand.vmem [shape: f32[2,128], index: 1, kind: input, shape index: {}]   ;;  %s239_s2 = inlined_call_operand.vmem [shape: f32[4,128], index: 2, kind: output, shape index: {}]  }
   0x1   :  { %s14_s11 = sshll.u32 %s237_s0, 4  ;;  %s15_s11 = int_to_ptr.vmem [resolvable:$true] %s14_s11 }
   0x2   :  { %s153_s12 = scalar_lea.vmem %s15_s11, 16  ;;  %p158_p1 = scmp.lt.s32.totalorder %s15_s11, %s15_s11 }
   0x3   :  { %p154_p0 = scmp.ne.s32.totalorder %s15_s11, %s153_s12  ;;  %p159_p2 = scmp.lt.s32.totalorder %s153_s12, %s153_s12 }
   0x5   :  { %p160_p3 = por %p159_p2, %p158_p1 }
   0x7   :  { %p161_p4 = pnand %p160_p3, %p154_p0 }
   0x9   :  { %164 = shalt.err (!%p161_p4)
}
   0xa   :  { %s167_s13 = smov [#allocation2]  }
   0xb   :  { %17 = dma.vmem_to_smem %s15_s11, 16, %s167_s13, [#allocation3]  }
   0xc   :  { %165 = dma.done.wait [#allocation3], 16  }
   0xd   :  { %166 = vsyncadd [#allocation3], 4294967280 }
   0xe   :  { %23 = sfence }
   0xf   :  { %s25_s14 = sld [smem:[#allocation2]]  ;;  %s132_s15 = sld [smem:[#allocation2 + $0x3]]  ;;  %v24_v0 = vld [vmem:[%s238_s1] sm:$0x3]  ;;  %vm120_vm0 = vcmask 1040384   ;;  %vm122_vm1 = vcmask 1041408  }
  0x10   :  { %s186_s16 = sld [smem:[#allocation2 + $0x6]]  ;;  %s134_s17 = sld [smem:[#allocation2 + $0x1]]  ;;  %vm124_vm2 = vcmask 1042432  }
  0x11   :  { %s135_s18 = sld [smem:[#allocation2 + $0x4]]  ;;  %s188_s0 = sld [smem:[#allocation2 + $0x7]] }
  0x12   :  { %s137_s19 = sld [smem:[#allocation2 + $0x2]]  ;;  %s138_s20 = sld [smem:[#allocation2 + $0x5]] }
  0x13   :  { %s193_s23 = sld [smem:[#allocation2 + $0x8]]  ;;  %s195_s24 = sld [smem:[#allocation2 + $0x9]] }
  0x14   :  { %s197_s25 = sld [smem:[#allocation2 + $0xd]]  ;;  %s199_s26 = sld [smem:[#allocation2 + $0x11]] }
  0x15   :  { %v26_v1 = vstv %s25_s14  ;;  %v29_v2 = vstv %s132_s15  ;;  %s201_s27 = sld [smem:[#allocation2 + $0xa]]  ;;  %s203_s28 = sld [smem:[#allocation2 + $0xe]] }
  0x16   :  { %v27_v3 = vmul.f32 %v26_v1, %v24_v0  ;;  %v30_v4 = vmul.f32 %v29_v2, %v24_v0  ;;  %v40_v5 = vstv %s134_s17  ;;  %s205_s29 = sld [smem:[#allocation2 + $0x12]]  ;;  %s207_s1 = sld [smem:[#allocation2 + $0xb]]  ;;  %v36_v12 = vstv %s186_s16 }
  0x17   :  { %v41_v6 = vmul.f32 %v40_v5, %v24_v0  ;;  %v43_v7 = vstv %s135_s18  ;;  %s209_s30 = sld [smem:[#allocation2 + $0xf]]  ;;  %s211_s3 = sld [smem:[#allocation2 + $0x13]]  ;;  %v50_v17 = vstv %s188_s0 }
  0x18   :  { %v32_v8 = vrot.slane %v30_v4, 1  ;;  %v44_v9 = vmul.f32 %v43_v7, %v24_v0  ;;  %v54_v10 = vstv %s137_s19  ;;  %v57_v11 = vstv %s138_s20  ;;  %s213_s4 = sld [smem:[#allocation2 + $0xc]]  ;;  %s215_s5 = sld [smem:[#allocation2 + $0x10]] }
  0x19   :  { %v55_v13 = vmul.f32 %v54_v10, %v24_v0  ;;  %v58_v14 = vmul.f32 %v57_v11, %v24_v0  ;;  %s218_s6 = sld [smem:[#allocation2 + $0x14]]  ;;  %v64_v19 = vstv %s193_s23  ;;  %v68_v20 = vstv %s195_s24 }
  0x1a   :  { %v34_v15 = vadd.f32 %v32_v8, %v27_v3  ;;  %v46_v16 = vrot.slane %v44_v9, 1  ;;  %v71_v21 = vstv %s197_s25  ;;  %v75_v24 = vstv %s199_s26 }
  0x1b   :  { %v60_v18 = vrot.slane %v58_v14, 1  ;;  %v79_v25 = vstv %s201_s27  ;;  %v82_v27 = vstv %s203_s28 }
  0x1c   :  { %v37_v22 = vadd.f32 %v36_v12, %v34_v15  ;;  %v48_v23 = vadd.f32 %v46_v16, %v41_v6  ;;  %v86_v28 = vstv %s205_s29  ;;  %v90_v29 = vstv %s207_s1 }
  0x1d   :  { %v62_v26 = vadd.f32 %v60_v18, %v55_v13  ;;  %v93_v32 = vstv %s209_s30  ;;  %v97_v35 = vstv %s211_s3 }
  0x1e   :  { %v38_v30 = vmax.f32 %v37_v22, 0.0  ;;  %v51_v31 = vadd.f32 %v50_v17, %v48_v23  ;;  %v101_v33 = vstv %s213_s4  ;;  %v104_v36 = vstv %s215_s5 }
  0x1f   :  { %v65_v34 = vadd.f32 %v64_v19, %v62_v26  ;;  %v108_v37 = vstv %s218_s6 }
  0x20   :  { %v52_v38 = vmax.f32 %v51_v31, 0.0  ;;  %v69_v39 = vmul.f32 %v68_v20, %v38_v30  ;;  %v80_v40 = vmul.f32 %v79_v25, %v38_v30  ;;  %v91_v41 = vmul.f32 %v90_v29, %v38_v30 }
  0x21   :  { %v66_v42 = vmax.f32 %v65_v34, 0.0  ;;  %v102_v43 = vmul.f32 %v101_v33, %v38_v30 }
  0x22   :  { %v72_v44 = vmul.f32 %v71_v21, %v52_v38  ;;  %v83_v45 = vmul.f32 %v82_v27, %v52_v38  ;;  %v94_v46 = vmul.f32 %v93_v32, %v52_v38  ;;  %v105_v47 = vmul.f32 %v104_v36, %v52_v38 }
  0x23   :  { %v76_v48 = vmul.f32 %v75_v24, %v66_v42  ;;  %v87_v49 = vmul.f32 %v86_v28, %v66_v42  ;;  %v98_v50 = vmul.f32 %v97_v35, %v66_v42  ;;  %v109_v51 = vmul.f32 %v108_v37, %v66_v42 }
  0x24   :  { %v73_v52 = vadd.f32 %v72_v44, %v69_v39  ;;  %v84_v53 = vadd.f32 %v83_v45, %v80_v40  ;;  %v95_v54 = vadd.f32 %v94_v46, %v91_v41  ;;  %v106_v55 = vadd.f32 %v105_v47, %v102_v43 }
  0x26   :  { %v77_v56 = vadd.f32 %v76_v48, %v73_v52  ;;  %v88_v57 = vadd.f32 %v87_v49, %v84_v53  ;;  %v99_v58 = vadd.f32 %v98_v50, %v95_v54  ;;  %v110_v59 = vadd.f32 %v109_v51, %v106_v55 }
  0x28   :  { %v112_v60 = vrot.slane %v88_v57, 7  ;;  %v115_v61 = vrot.slane %v99_v58, 6  ;;  %v118_v62 = vrot.slane %v110_v59, 5 }
  0x2a   :  { %v121_v63 = vsel %vm120_vm0, %v77_v56, %v112_v60 }
  0x2b   :  { %v123_v0 = vsel %vm122_vm1, %v121_v63, %v115_v61 }
  0x2c   :  { %v125_v1 = vsel %vm124_vm2, %v123_v0, %v118_v62 }
  0x2d   :  { %126 = vst [vmem:[%s239_s2] sm:$0xf] %v125_v1 }
  0x2e   :  { %131 = vsyncpa [#allocation3], 1 }

</bundles_post_ra>
